<compile_context>
chip_gen: v7x
topology: tpu7x:2x2x1
jax: 0.10.0
libtpu: 0.0.40
codegen_flags: <defaults>
</compile_context>

<pallas_src>
import math

import numpy as np
import jax
import jax.numpy as jnp
from jax import lax
from jax.experimental import pallas as pl
from jax.experimental.pallas import tpu as pltpu


def get_filter_np(filt_size=3):
    if filt_size == 1:
        a = np.array([1.0])
    elif filt_size == 2:
        a = np.array([1.0, 1.0])
    elif filt_size == 3:
        a = np.array([1.0, 2.0, 1.0])
    elif filt_size == 4:
        a = np.array([1.0, 3.0, 3.0, 1.0])
    elif filt_size == 5:
        a = np.array([1.0, 4.0, 6.0, 4.0, 1.0])
    elif filt_size == 6:
        a = np.array([1.0, 5.0, 10.0, 10.0, 5.0, 1.0])
    elif filt_size == 7:
        a = np.array([1.0, 6.0, 15.0, 20.0, 15.0, 6.0, 1.0])
    else:
        raise ValueError(filt_size)
    filt = a[:, None] * a[None, :]
    filt = filt / filt.sum()
    return filt.astype(np.float32)


_PAD_MODE = {"refl": "reflect", "reflect": "reflect",
             "repl": "edge", "replicate": "edge", "zero": "zero"}
_JNP_PAD = {"reflect": "reflect", "edge": "edge", "zero": "constant"}


# --------------------------------------------------------------------------------------
# Tiling plan
# --------------------------------------------------------------------------------------
def _vmem_caps():
    """(tile working-set budget, vmem_limit_bytes) derived from the actual chip."""
    total = None
    try:
        info = pltpu.get_tpu_info()
        total = getattr(info, "vmem_capacity_bytes", None)
    except Exception:
        total = None
    if not total:
        total = 64 * 1024 * 1024                    # conservative (v7x per-TC size)
    limit = min(int(0.6 * total), 96 * 1024 * 1024)
    budget = min(limit // 2, 24 * 1024 * 1024)
    return budget, limit


def _plan_tiles(Cp, W, Wp, Ho, Wo, fs, stride, isz, budget):
    """Choose (c_tile, tHo, rows_per_chunk, halo).

    tHo is the number of output rows per grid step; it is kept a multiple of
    g = halo / gcd(halo, stride) so the halo block start is block-aligned.
    """
    halo = max(fs - stride, 0)
    g = 1 if halo == 0 else halo // math.gcd(halo, stride)

    if Cp % 128 == 0:
        c_cands = [c for c in range(Cp, 0, -128) if Cp % c == 0]
    else:
        c_cands = [Cp]                              # full-dim lane block (small C)

    def bytes_needed(t, ct):
        tHi = t * stride + halo
        return (2 * tHi * W * ct * isz              # double-buffered input (main + halo)
                + 2 * t * Wo * ct * isz             # double-buffered output
                + tHi * Wp * ct * isz)              # padded-tile scratch (single-buffer)

    tHo_cap = ((Ho + g - 1) // g) * g               # no point exceeding one full plane

    def max_rows(ct):
        t, best = g, 0
        while t <= tHo_cap:
            if bytes_needed(t, ct) > budget:
                break
            best = t
            t += g
        return best

    c_tile, tHo = c_cands[-1], g
    for ct in c_cands:                              # prefer the widest channel tile that
        r = max_rows(ct)                            # still allows a decent row tile
        if r >= min(tHo_cap, 8 * g):
            c_tile, tHo = ct, r
            break
        if r > tHo:
            c_tile, tHo = ct, r

    # Prefer >= 2 H tiles so v7x's two TensorCores (and the DMA pipeline) both get work.
    if tHo_cap > g:
        half = ((Ho + 1) // 2 + g - 1) // g * g
        tHo = min(tHo, max(g, half))
    tHo = max(tHo, g)

    # Output rows accumulated per in-kernel chunk (kept resident in vregs, ~64 KiB f32).
    rc_target = max(1, (16 * 1024) // max(1, Wo * c_tile))
    rc = 1
    for d in range(min(rc_target, tHo), 0, -1):
        if tHo % d == 0:
            rc = d
            break
    return c_tile, tHo, rc, halo


# --------------------------------------------------------------------------------------
# Kernel
# --------------------------------------------------------------------------------------
def _make_kernel(*, tHo, tHi, W, Wp, Wo, c_tile, stride, pad_lo, pad_hi,
                 mode, groups, rc, has_halo):
    n_chunks = tHo // rc

    def _wpad(rows):
        """Width padding by value concat; corners are correct because `rows` already
        carries the (wrapper-applied) H padding."""
        if pad_lo == 0 and pad_hi == 0:
            return rows
        if mode == "zero":
            lefts = [jnp.zeros((tHi, 1, c_tile), rows.dtype)] * pad_lo
            rights = [jnp.zeros((tHi, 1, c_tile), rows.dtype)] * pad_hi
        elif mode == "reflect":
            lefts = [rows[:, pad_lo - p:pad_lo - p + 1, :] for p in range(pad_lo)]
            rights = [rows[:, W - 2 - p:W - 1 - p, :] for p in range(pad_hi)]
        else:  # edge / replicate
            lefts = [rows[:, 0:1, :]] * pad_lo
            rights = [rows[:, W - 1:W, :]] * pad_hi
        return jnp.concatenate(lefts + [rows] + rights, axis=1)

    def _row_slice(start):
        return pl.ds(start, rc, stride) if stride != 1 else pl.ds(start, rc)

    def _col_slice(j):
        return pl.ds(j, Wo, stride) if stride != 1 else pl.ds(j, Wo)

    def _chunk(xp_ref, o_ref, r0):
        # All fs*fs taps for `rc` output rows, accumulator stays in vregs; taps sharing
        # a coefficient are summed first and scaled once.
        acc = None
        for coeff, taps in groups:
            gsum = None
            for (i, j) in taps:
                blk = xp_ref[_row_slice(r0 * stride + i), _col_slice(j), :]
                blk = blk.astype(jnp.float32)
                gsum = blk if gsum is None else gsum + blk
            term = gsum * coeff
            acc = term if acc is None else acc + term
        o_ref[pl.ds(r0, rc), :, :] = acc.astype(o_ref.dtype)

    def body(xm_ref, xhalo_ref, o_ref, xp_ref):
        # 1) assemble this tile's rows (main block + halo rows from the next window).
        rows = xm_ref[...]
        if xhalo_ref is not None:
            rows = jnp.concatenate([rows, xhalo_ref[...]], axis=0)
        # 2) W padding by value concat, single padded-tile store (input dtype).
        xp_ref[...] = _wpad(rows)
        # 3) depthwise strided conv: strided ref reads, vreg-resident accumulator.
        if n_chunks <= 8:
            for c in range(n_chunks):
                _chunk(xp_ref, o_ref, c * rc)
        else:
            @pl.loop(0, n_chunks)
            def _(c):
                _chunk(xp_ref, o_ref, c * rc)

    if has_halo:
        def kernel(xm_ref, xh_ref, o_ref, xp_ref):
            body(xm_ref, xh_ref, o_ref, xp_ref)
    else:
        def kernel(xm_ref, o_ref, xp_ref):
            body(xm_ref, None, o_ref, xp_ref)
    return kernel


# --------------------------------------------------------------------------------------
# Wrapper
# --------------------------------------------------------------------------------------
def downsample(x, channels, pad_type="reflect", filt_size=3, stride=2, pad_off=0):
    """JAX/Pallas equivalent of Downsample.forward.  x: (N, C, H, W)."""
    N, C, H, W = x.shape
    assert C == channels

    pad_lo = int(1.0 * (filt_size - 1) / 2) + pad_off
    pad_hi = int(np.ceil(1.0 * (filt_size - 1) / 2)) + pad_off
    mode = _PAD_MODE[pad_type]

    if filt_size == 1:
        # Pure (optional pad +) strided slicing, no compute -> plain JAX, like PyTorch.
        if pad_off == 0:
            return x[:, :, ::stride, ::stride]
        xp = jnp.pad(x, ((0, 0), (0, 0), (pad_lo, pad_hi), (pad_lo, pad_hi)),
                     mode=_JNP_PAD[mode])
        return xp[:, :, ::stride, ::stride]

    Hp = H + pad_lo + pad_hi
    Wp = W + pad_lo + pad_hi
    Ho = (Hp - filt_size) // stride + 1
    Wo = (Wp - filt_size) // stride + 1

    # Filter coefficients (identical for every channel) grouped by value.
    coeffs = get_filter_np(filt_size)
    groups_d = {}
    for i in range(filt_size):
        for j in range(filt_size):
            groups_d.setdefault(float(coeffs[i, j]), []).append((i, j))
    groups = sorted(groups_d.items())

    # Channels-last so C rides the 128-wide lane axis inside the kernel.
    # TODO(synk): keep the whole pipeline NHWC (or fuse the transpose in-kernel) to
    # drop these extra HBM passes.
    x_nhwc = jnp.transpose(x, (0, 2, 3, 1))

    # Lane-dense channels: pad large, non-128-multiple C up to a multiple of 128.
    C_pad = ((C + 127) // 128) * 128 if (C > 128 and C % 128 != 0) else C
    if C_pad != C:
        x_nhwc = jnp.pad(x_nhwc, ((0, 0), (0, 0), (0, 0), (0, C_pad - C)))

    # Conv H-padding applied in the wrapper: every H tile then reads a uniform,
    # in-bounds row window, and the in-kernel W pad reflects rows that already carry
    # the H pad (separable pad == ReflectionPad2d / ReplicationPad2d / ZeroPad2d).
    x_h = jnp.pad(x_nhwc, ((0, 0), (pad_lo, pad_hi), (0, 0), (0, 0)),
                  mode=_JNP_PAD[mode])

    isz = jnp.dtype(x.dtype).itemsize
    budget, vmem_limit = _vmem_caps()
    c_tile, tHo, rc, halo = _plan_tiles(C_pad, W, Wp, Ho, Wo, filt_size, stride,
                                        isz, budget)
    tHi_main = tHo * stride
    tHi = tHi_main + halo
    nHt = pl.cdiv(Ho, tHo)
    Ho_round = nHt * tHo

    # Round the padded H up so every tile's main + halo window is in bounds.
    rows_needed = nHt * tHi_main + halo
    if rows_needed > Hp:
        x_h = jnp.pad(x_h, ((0, 0), (0, rows_needed - Hp), (0, 0), (0, 0)))

    has_halo = halo > 0
    kernel = _make_kernel(tHo=tHo, tHi=tHi, W=W, Wp=Wp, Wo=Wo, c_tile=c_tile,
                          stride=stride, pad_lo=pad_lo, pad_hi=pad_hi,
                          mode=mode, groups=groups, rc=rc, has_halo=has_halo)

    in_specs = [pl.BlockSpec((pl.Squeezed(), tHi_main, W, c_tile),
                             lambda n, t, cb: (n, t, 0, cb))]
    if has_halo:
        halo_blocks_per_tile = tHi_main // halo      # exact by construction of tHo
        in_specs.append(pl.BlockSpec(
            (pl.Squeezed(), halo, W, c_tile),
            lambda n, t, cb: (n, (t + 1) * halo_blocks_per_tile, 0, cb)))

    call = pl.pallas_call(
        kernel,
        out_shape=jax.ShapeDtypeStruct((N, Ho_round, Wo, C_pad), x.dtype),
        grid_spec=pltpu.PrefetchScalarGridSpec(
            num_scalar_prefetch=0,
            grid=(N, nHt, C_pad // c_tile),
            in_specs=in_specs,
            out_specs=pl.BlockSpec((pl.Squeezed(), tHo, Wo, c_tile),
                                   lambda n, t, cb: (n, t, 0, cb)),
            scratch_shapes=[pltpu.VMEM((tHi, Wp, c_tile), x.dtype)],
        ),
        compiler_params=pltpu.CompilerParams(
            dimension_semantics=("parallel", "parallel", "parallel"),
            vmem_limit_bytes=int(vmem_limit),
        ),
    )
    out_nhwc = call(x_h, x_h) if has_halo else call(x_h)

    if Ho_round != Ho:
        out_nhwc = out_nhwc[:, :Ho]
    if C_pad != C:
        out_nhwc = out_nhwc[..., :C]
    return jnp.transpose(out_nhwc, (0, 3, 1, 2))


# --------------------------------------------------------------------------------------
# Reference + tests
# --------------------------------------------------------------------------------------
def _reference_downsample(x, pad_type="reflect", filt_size=3, stride=2, pad_off=0):
    """Pure-JAX reference (pad + depthwise conv) for verification (f32)."""
    x = x.astype(jnp.float32)
    pad_lo = int(1.0 * (filt_size - 1) / 2) + pad_off
    pad_hi = int(np.ceil(1.0 * (filt_size - 1) / 2)) + pad_off
    jmode = _JNP_PAD[_PAD_MODE[pad_type]]
    xp = jnp.pad(x, ((0, 0), (0, 0), (pad_lo, pad_hi), (pad_lo, pad_hi)), mode=jmode)
    filt = jnp.asarray(get_filter_np(filt_size))
    C = x.shape[1]
    w = jnp.broadcast_to(filt[None, None], (C, 1, filt_size, filt_size))
    return lax.conv_general_dilated(
        xp, w, window_strides=(stride, stride), padding="VALID",
        feature_group_count=C, dimension_numbers=("NCHW", "OIHW", "NCHW"),
        precision=lax.Precision.HIGHEST)


if __name__ == "__main__":
    key = jax.random.PRNGKey(0)
    k1, k2, k3 = jax.random.split(key, 3)

    N, C, H, W = 2, 4, 16, 16
    x = jax.random.normal(k1, (N, C, H, W), dtype=jnp.float32)

    # 1) CUT default: reflect pad, filt_size=3, stride=2.
    y = downsample(x, channels=C, pad_type="reflect", filt_size=3, stride=2)
    y = jax.block_until_ready(y)
    assert y.shape == (N, C, H // 2, W // 2), y.shape
    np.testing.assert_allclose(np.asarray(y),
                               np.asarray(_reference_downsample(x, "reflect", 3, 2)),
                               rtol=1e-5, atol=1e-5)

    # 2) Even filter (asymmetric pad) with zero padding.
    y2 = downsample(x, channels=C, pad_type="zero", filt_size=4, stride=2)
    y2 = jax.block_until_ready(y2)
    np.testing.assert_allclose(np.asarray(y2),
                               np.asarray(_reference_downsample(x, "zero", 4, 2)),
                               rtol=1e-5, atol=1e-5)

    # 3) filt_size == 1 fast path (pure slicing).
    y3 = jax.block_until_ready(downsample(x, channels=C, filt_size=1, stride=2))
    np.testing.assert_allclose(np.asarray(y3), np.asarray(x[:, :, ::2, ::2]))

    # 4) Replicate pad, filt_size=2 (no halo rows needed).
    y4 = downsample(x, channels=C, pad_type="replicate", filt_size=2, stride=2)
    y4 = jax.block_until_ready(y4)
    np.testing.assert_allclose(np.asarray(y4),
                               np.asarray(_reference_downsample(x, "replicate", 2, 2)),
                               rtol=1e-5, atol=1e-5)

    # 5) Larger filter (halo=3 -> row-tile alignment constraint exercised).
    x5 = jax.random.normal(k2, (1, 4, 12, 12), dtype=jnp.float32)
    y5 = downsample(x5, channels=4, pad_type="reflect", filt_size=5, stride=2)
    y5 = jax.block_until_ready(y5)
    np.testing.assert_allclose(np.asarray(y5),
                               np.asarray(_reference_downsample(x5, "reflect", 5, 2)),
                               rtol=1e-5, atol=1e-5)

    # 6) Odd sizes: partial last H tile + non-aligned W/C.
    x6 = jax.random.normal(k3, (1, 3, 14, 10), dtype=jnp.float32)
    y6 = downsample(x6, channels=3, pad_type="reflect", filt_size=3, stride=2)
    y6 = jax.block_until_ready(y6)
    np.testing.assert_allclose(np.asarray(y6),
                               np.asarray(_reference_downsample(x6, "reflect", 3, 2)),
                               rtol=1e-5, atol=1e-5)

    # 7) bf16 input: input-dtype scratch, f32 accumulation.
    xb = x.astype(jnp.bfloat16)
    y7 = downsample(xb, channels=C, pad_type="reflect", filt_size=3, stride=2)
    y7 = jax.block_until_ready(y7)
    np.testing.assert_allclose(np.asarray(y7, dtype=np.float32),
                               np.asarray(_reference_downsample(xb, "reflect", 3, 2)),
                               rtol=2e-2, atol=2e-2)

    print("KERNEL_OK")
</pallas_src>

<mosaic_0001>
module attributes {stable_mosaic.version = 11 : i64} {
  func.func @kernel(%arg0: i32, %arg1: i32, %arg2: i32, %arg3: memref<1x8x16x4xf32, #tpu.memory_space<vmem>>, %arg4: memref<1x1x16x4xf32, #tpu.memory_space<vmem>>, %arg5: memref<1x4x8x4xf32, #tpu.memory_space<vmem>>, %arg6: memref<9x18x4xf32, #tpu.memory_space<vmem>>) attributes {dimension_semantics = [#tpu.dimension_semantics<parallel>, #tpu.dimension_semantics<parallel>, #tpu.dimension_semantics<parallel>], iteration_bounds = array<i64: 2, 2, 1>, scalar_prefetch = 0 : i64, scratch_operands = 1 : i64, tpu.core_type = #tpu.core_type<tc>, window_params = [{transform_indices = @transform_0, window_bounds = array<i64: 1, 8, 16, 4>}, {transform_indices = @transform_1, window_bounds = array<i64: 1, 1, 16, 4>}, {transform_indices = @transform_2, window_bounds = array<i64: 1, 4, 8, 4>}]} {
    %c0 = arith.constant 0 : index
    %c0_0 = arith.constant 0 : index
    %c0_1 = arith.constant 0 : index
    %c0_2 = arith.constant 0 : index
    %0 = vector.load %arg3[%c0, %c0_0, %c0_1, %c0_2] : memref<1x8x16x4xf32, #tpu.memory_space<vmem>>, vector<1x8x16x4xf32>
    %1 = vector.shape_cast %0 : vector<1x8x16x4xf32> to vector<8x16x4xf32>
    %c0_3 = arith.constant 0 : index
    %c0_4 = arith.constant 0 : index
    %c0_5 = arith.constant 0 : index
    %c0_6 = arith.constant 0 : index
    %2 = vector.load %arg4[%c0_3, %c0_4, %c0_5, %c0_6] : memref<1x1x16x4xf32, #tpu.memory_space<vmem>>, vector<1x1x16x4xf32>
    %3 = vector.shape_cast %2 : vector<1x1x16x4xf32> to vector<1x16x4xf32>
    %4 = tpu.concatenate %1, %3 in 0 : vector<8x16x4xf32>, vector<1x16x4xf32> -> vector<9x16x4xf32>
    %5 = vector.extract_strided_slice %4 {offsets = [0, 1, 0], sizes = [9, 1, 4], strides = [1, 1, 1]} : vector<9x16x4xf32> to vector<9x1x4xf32>
    %6 = vector.extract_strided_slice %4 {offsets = [0, 14, 0], sizes = [9, 1, 4], strides = [1, 1, 1]} : vector<9x16x4xf32> to vector<9x1x4xf32>
    %7 = tpu.concatenate %5, %4, %6 in 1 : vector<9x1x4xf32>, vector<9x16x4xf32>, vector<9x1x4xf32> -> vector<9x18x4xf32>
    %c0_7 = arith.constant 0 : index
    %c0_8 = arith.constant 0 : index
    %c0_9 = arith.constant 0 : index
    %8 = vector.load %arg6[%c0_7, %c0_8, %c0_9] : memref<9x18x4xf32, #tpu.memory_space<vmem>>, vector<9x18x4xf32>
    tpu.vector_store %arg6[%c0_7, %c0_8, %c0_9], %7 {strides = array<i32>} : memref<9x18x4xf32, #tpu.memory_space<vmem>>, vector<9x18x4xf32>,
    %c0_10 = arith.constant 0 : index
    %c0_11 = arith.constant 0 : index
    %c0_12 = arith.constant 0 : index
    %9 = tpu.strided_load %arg6[%c0_10, %c0_11, %c0_12] {strides = array<i32: 2, 2, 1>} : memref<9x18x4xf32, #tpu.memory_space<vmem>>, vector<4x8x4xf32>
    %c0_13 = arith.constant 0 : index
    %c2 = arith.constant 2 : index
    %c0_14 = arith.constant 0 : index
    %10 = tpu.strided_load %arg6[%c0_13, %c2, %c0_14] {strides = array<i32: 2, 2, 1>} : memref<9x18x4xf32, #tpu.memory_space<vmem>>, vector<4x8x4xf32>
    %11 = arith.addf %9, %10 : vector<4x8x4xf32>
    %c2_15 = arith.constant 2 : index
    %c0_16 = arith.constant 0 : index
    %c0_17 = arith.constant 0 : index
    %12 = tpu.strided_load %arg6[%c2_15, %c0_16, %c0_17] {strides = array<i32: 2, 2, 1>} : memref<9x18x4xf32, #tpu.memory_space<vmem>>, vector<4x8x4xf32>
    %13 = arith.addf %11, %12 : vector<4x8x4xf32>
    %c2_18 = arith.constant 2 : index
    %c2_19 = arith.constant 2 : index
    %c0_20 = arith.constant 0 : index
    %14 = tpu.strided_load %arg6[%c2_18, %c2_19, %c0_20] {strides = array<i32: 2, 2, 1>} : memref<9x18x4xf32, #tpu.memory_space<vmem>>, vector<4x8x4xf32>
    %15 = arith.addf %13, %14 : vector<4x8x4xf32>
    %cst = arith.constant 6.250000e-02 : f32
    %16 = vector.broadcast %cst : f32 to vector<4x8x4xf32>
    %17 = arith.mulf %15, %16 : vector<4x8x4xf32>
    %c0_21 = arith.constant 0 : index
    %c1 = arith.constant 1 : index
    %c0_22 = arith.constant 0 : index
    %18 = tpu.strided_load %arg6[%c0_21, %c1, %c0_22] {strides = array<i32: 2, 2, 1>} : memref<9x18x4xf32, #tpu.memory_space<vmem>>, vector<4x8x4xf32>
    %c1_23 = arith.constant 1 : index
    %c0_24 = arith.constant 0 : index
    %c0_25 = arith.constant 0 : index
    %19 = tpu.strided_load %arg6[%c1_23, %c0_24, %c0_25] {strides = array<i32: 2, 2, 1>} : memref<9x18x4xf32, #tpu.memory_space<vmem>>, vector<4x8x4xf32>
    %20 = arith.addf %18, %19 : vector<4x8x4xf32>
    %c1_26 = arith.constant 1 : index
    %c2_27 = arith.constant 2 : index
    %c0_28 = arith.constant 0 : index
    %21 = tpu.strided_load %arg6[%c1_26, %c2_27, %c0_28] {strides = array<i32: 2, 2, 1>} : memref<9x18x4xf32, #tpu.memory_space<vmem>>, vector<4x8x4xf32>
    %22 = arith.addf %20, %21 : vector<4x8x4xf32>
    %c2_29 = arith.constant 2 : index
    %c1_30 = arith.constant 1 : index
    %c0_31 = arith.constant 0 : index
    %23 = tpu.strided_load %arg6[%c2_29, %c1_30, %c0_31] {strides = array<i32: 2, 2, 1>} : memref<9x18x4xf32, #tpu.memory_space<vmem>>, vector<4x8x4xf32>
    %24 = arith.addf %22, %23 : vector<4x8x4xf32>
    %cst_32 = arith.constant 1.250000e-01 : f32
    %25 = vector.broadcast %cst_32 : f32 to vector<4x8x4xf32>
    %26 = arith.mulf %24, %25 : vector<4x8x4xf32>
    %27 = arith.addf %17, %26 : vector<4x8x4xf32>
    %c1_33 = arith.constant 1 : index
    %c1_34 = arith.constant 1 : index
    %c0_35 = arith.constant 0 : index
    %28 = tpu.strided_load %arg6[%c1_33, %c1_34, %c0_35] {strides = array<i32: 2, 2, 1>} : memref<9x18x4xf32, #tpu.memory_space<vmem>>, vector<4x8x4xf32>
    %cst_36 = arith.constant 2.500000e-01 : f32
    %29 = vector.broadcast %cst_36 : f32 to vector<4x8x4xf32>
    %30 = arith.mulf %28, %29 : vector<4x8x4xf32>
    %31 = arith.addf %27, %30 : vector<4x8x4xf32>
    %c0_37 = arith.constant 0 : index
    %c0_38 = arith.constant 0 : index
    %c0_39 = arith.constant 0 : index
    %c0_40 = arith.constant 0 : index
    %32 = vector.load %arg5[%c0_37, %c0_38, %c0_39, %c0_40] : memref<1x4x8x4xf32, #tpu.memory_space<vmem>>, vector<1x4x8x4xf32>
    %33 = vector.shape_cast %32 : vector<1x4x8x4xf32> to vector<4x8x4xf32>
    %34 = vector.shape_cast %31 : vector<4x8x4xf32> to vector<1x4x8x4xf32>
    tpu.vector_store %arg5[%c0_37, %c0_38, %c0_39, %c0_40], %34 {strides = array<i32>} : memref<1x4x8x4xf32, #tpu.memory_space<vmem>>, vector<1x4x8x4xf32>,
    return
  }
  func.func @transform_0(%arg0: i32, %arg1: i32, %arg2: i32) -> (i32, i32, i32, i32) {
    %c0_i32 = arith.constant 0 : i32
    %c0_i32_0 = arith.constant 0 : i32
    return %arg0, %arg1, %c0_i32, %arg2 : i32, i32, i32, i32
  }
  func.func @transform_1(%arg0: i32, %arg1: i32, %arg2: i32) -> (i32, i32, i32, i32) {
    %c1_i32 = arith.constant 1 : i32
    %0 = arith.addi %arg1, %c1_i32 : i32
    %c8_i32 = arith.constant 8 : i32
    %1 = arith.muli %0, %c8_i32 : i32
    %c0_i32 = arith.constant 0 : i32
    %c0_i32_0 = arith.constant 0 : i32
    return %arg0, %1, %c0_i32, %arg2 : i32, i32, i32, i32
  }
  func.func @transform_2(%arg0: i32, %arg1: i32, %arg2: i32) -> (i32, i32, i32, i32) {
    %c0_i32 = arith.constant 0 : i32
    %c0_i32_0 = arith.constant 0 : i32
    return %arg0, %arg1, %c0_i32, %arg2 : i32, i32, i32, i32
  }
}

</mosaic_0001>

<bundles_post_ra>
// kernel: tpu_custom_call.1
= control target key start
LH: loop header
LB: loop body
LE: loop exit
PB: predicated region body
PF: predicated region fallthrough
CT: control target
= control target key end

     0   :  { %s864_s9 = smov 0   ;;  %s866_s10 = smov 0   ;;  %s1035_s0 = inlined_call_operand.vmem [shape: f32[2,18,16,4], index: 0, kind: input, shape index: {}]   ;;  %s1036_s1 = inlined_call_operand.vmem [shape: f32[2,18,16,4], index: 1, kind: input, shape index: {}]   ;;  %s1037_s2 = inlined_call_operand.vmem [shape: f32[2,8,8,4], index: 2, kind: output, shape index: {}]  }
   0x1   :  { %s868_s11 = smov 0   ;;  %s870_s12 = smov 0  }
   0x2   :  { %s872_s13 = smov 0  }
   0x3 LB: > { %s27_s14 = sadd.s32 1, %s839_s11  ;;  %s31_s15 = sadd.s32 1, %s843_s12  ;;  %s847_s13 = sphi %s872_s13, %s12_s13   ;;  %s843_s12 = sphi %s870_s12, %s1042_s12   ;;  %s839_s11 = sphi %s868_s11, %s1041_s11   ;;  %s835_s10 = sphi %s866_s10, %s1040_s10   ;;  %s831_s9 = sphi %s864_s9, %s1039_s9  }
   0x4   : > { %p29_p0 = scmp.ge.s32.totalorder %s27_s14, 2  ;;  %p750_p1 = scmp.ge.s32.totalorder %s847_s13, 1 }
   0x5   : > { %p187_p2 = scmp.lt.s32.totalorder %s847_s13, 5 }
   0x6   : > { %s1044_s14 = smov (%p29_p0, %s27_s14), 0  ;;  %s1046_s15 = smov (!%p29_p0, %s31_s15), %s843_s12 }
   0x7   : > { %p188_p3 = pnand %p750_p1, %p187_p2  ;;  %p33_p4 = scmp.ge.s32.totalorder %s1046_s15, 2 }
   0x8   : > { %s751_s16 = sshll.u32 (!%p188_p3), %s831_s9, 3  ;;  %p249_p5 = scmp.lt.s32.totalorder (!%p188_p3), %s835_s10, 1  ;;  %vm350_vm0 = vcmask (!%p188_p3), 1040384   ;;  %vm441_vm1 = vcmask (!%p188_p3), 31744   ;;  %vm444_vm2 = vcmask (!%p188_p3), 25600  }
   0x9   : > { %s1048_s15 = smov (%p33_p4, %s1046_s15), 0  ;;  %191 = sbr.rel (%p188_p3) target bundleno = 65 (0x41), region = 28 }
   0xa   : > { %p251_p6 = scmp.lt.s32.totalorder (!%p188_p3), %s751_s16, 17  ;;  %s767_s17 = sadd.s32 (!%p188_p3), 8, %s751_s16 }
   0xb   : > { %p271_p7 = scmp.lt.s32.totalorder (!%p188_p3), %s767_s17, 17  ;;  %s757_s27 = sshll.u32 (!%p188_p3), %s831_s9, 2 }
   0xc   : > { %p945_p8 = scmp.lt.s32.totalorder (!%p188_p3), %s757_s27, 7 }
  0x10   : > { %s1050_s10 = smov (!%p249_p5, %s835_s10), 1  ;;  %s1052_s16 = smov (!%p251_p6, %s751_s16), 17 }
  0x11   : > { %s768_s18 = smul.u32 36, %s1050_s10  ;;  %s752_s19 = sshll.u32 %s1052_s16, 1 }
  0x12   : > { %s1054_s17 = smov (!%p271_p7, %s767_s17), 17  ;;  %s758_s5 = sshll.u32 %s1050_s10, 3 }
  0x13   : > { %s258_s20 = sadd.s32 %s768_s18, %s752_s19  ;;  %s755_s25 = sshll.u32 %s1054_s17, 1 }
  0x14   : > { %s753_s21 = sshll.u32 %s258_s20, 3  ;;  %s927_s26 = sadd.s32 %s768_s18, %s755_s25 }
  0x15   : > { %s905_s24 = scalar_lea.vmem %s1035_s0, %s753_s21  ;;  %s756_s28 = sshll.u32 %s927_s26, 3 }
  0x16   : > { %v296_v0 = vld [vmem:[%s905_s24] sm:$0xff]  ;;  %v297_v1 = vld [vmem:[%s905_s24 + $0x8] sm:$0xff]  ;;  %v298_v2 = vld [vmem:[%s905_s24 + $0x10] sm:$0xff]  ;;  %s280_s4 = scalar_lea.vmem %s1036_s1, %s756_s28  ;;  %s1056_s27 = smov (!%p945_p8, %s757_s27), 7 }
  0x17   : > { %v323_v3 = vrot.slane %v296_v0, 1  ;;  %v351_v4 = vrot.slane %v296_v0, 7  ;;  %v352_v5 = vrot.slane %v297_v1, 7  ;;  %v405_v6 = vrot.slane %v297_v1, 5  ;;  %v299_v7 = vld [vmem:[%s905_s24 + $0x18] sm:$0xff]  ;;  %v300_v8 = vld [vmem:[%s905_s24 + $0x20] sm:$0xff]  ;;  %s994_s6 = sadd.s32 %s758_s5, %s1056_s27 }
  0x18   : > { %v324_v9 = vrot.slane %v298_v2, 1  ;;  %v354_v10 = vrot.slane %v298_v2, 7  ;;  %v355_v11 = vrot.slane %v299_v7, 7  ;;  %v406_v12 = vrot.slane %v299_v7, 5  ;;  %v301_v13 = vld [vmem:[%s905_s24 + $0x28] sm:$0xff]  ;;  %v302_v14 = vld [vmem:[%s905_s24 + $0x30] sm:$0xff] }
  0x19   : > { %v423_v15 = vsel %vm350_vm0, %v323_v3, %v351_v4  ;;  %v353_v16 = vsel %vm350_vm0, %v351_v4, %v352_v5  ;;  %v432_v17 = vsel %vm350_vm0, %v352_v5, %v405_v6  ;;  %v325_v18 = vrot.slane %v300_v8, 1  ;;  %v303_v19 = vld [vmem:[%s905_s24 + $0x38] sm:$0xff]  ;;  %v304_v20 = vld [vmem:[%s905_s24 + $0x40] sm:$0xff]  ;;  %v305_v29 = vld [vmem:[%s905_s24 + $0x48] sm:$0xff]  ;;  %s759_s7 = sshll.u32 %s994_s6, 3 }
  0x1a   : > { %442 = vst.msk [vmem:[#allocation2] sm:$0xff] %vm441_vm1, %v423_v15  ;;  %443 = vst.msk [vmem:[#allocation2 + $0x8] sm:$0xff] %vm441_vm1, %v353_v16  ;;  %v424_v21 = vsel %vm350_vm0, %v324_v9, %v354_v10  ;;  %v356_v22 = vsel %vm350_vm0, %v354_v10, %v355_v11  ;;  %v433_v23 = vsel %vm350_vm0, %v355_v11, %v406_v12  ;;  %v357_v24 = vrot.slane %v300_v8, 7  ;;  %v306_v34 = vld [vmem:[%s905_s24 + $0x50] sm:$0xff]  ;;  %v307_v35 = vld [vmem:[%s905_s24 + $0x58] sm:$0xff]  ;;  %s1010_s10 = scalar_lea.vmem %s1037_s2, %s759_s7 }
  0x1b   : > { %445 = vst.msk [vmem:[#allocation2 + $0x10] sm:$0x3] %vm444_vm2, %v432_v17  ;;  %448 = vst.msk [vmem:[#allocation2 + $0x28] sm:$0x3] %vm444_vm2, %v433_v23  ;;  %v358_v25 = vrot.slane %v301_v13, 7  ;;  %v407_v26 = vrot.slane %v301_v13, 5 }
  0x1c   : > { %446 = vst.msk [vmem:[#allocation2 + $0x18] sm:$0xff] %vm441_vm1, %v424_v21  ;;  %447 = vst.msk [vmem:[#allocation2 + $0x20] sm:$0xff] %vm441_vm1, %v356_v22  ;;  %v326_v27 = vrot.slane %v302_v14, 1  ;;  %v360_v28 = vrot.slane %v302_v14, 7  ;;  %v425_v30 = vsel %vm350_vm0, %v325_v18, %v357_v24  ;;  %v361_v31 = vrot.slane %v303_v19, 7  ;;  %v308_v40 = vld [vmem:[%s905_s24 + $0x60] sm:$0xff] }
  0x1d   : > { %v408_v32 = vrot.slane %v303_v19, 5  ;;  %v327_v33 = vrot.slane %v304_v20, 1  ;;  %449 = vst.msk [vmem:[#allocation2 + $0x30] sm:$0xff] %vm441_vm1, %v425_v30  ;;  %v359_v36 = vsel %vm350_vm0, %v357_v24, %v358_v25  ;;  %v434_v37 = vsel %vm350_vm0, %v358_v25, %v407_v26  ;;  %v309_v45 = vld [vmem:[%s905_s24 + $0x68] sm:$0xff]  ;;  %v310_v50 = vld [vmem:[%s905_s24 + $0x70] sm:$0xff]  ;;  %v311_v55 = vld [vmem:[%s905_s24 + $0x78] sm:$0xff] }
  0x1e   : > { %v426_v38 = vsel %vm350_vm0, %v326_v27, %v360_v28  ;;  %v363_v39 = vrot.slane %v304_v20, 7  ;;  %450 = vst.msk [vmem:[#allocation2 + $0x38] sm:$0xff] %vm441_vm1, %v359_v36  ;;  %v362_v41 = vsel %vm350_vm0, %v360_v28, %v361_v31  ;;  %v364_v43 = vrot.slane %v305_v29, 7  ;;  %v312_v60 = vld [vmem:[%s280_s4] sm:$0xff]  ;;  %v313_v2 = vld [vmem:[%s280_s4 + $0x8] sm:$0xff] }
  0x1f   : > { %451 = vst.msk [vmem:[#allocation2 + $0x40] sm:$0x3] %vm444_vm2, %v434_v37  ;;  %v435_v42 = vsel %vm350_vm0, %v361_v31, %v408_v32  ;;  %v409_v44 = vrot.slane %v305_v29, 5  ;;  %v328_v47 = vrot.slane %v306_v34, 1  ;;  %v366_v48 = vrot.slane %v306_v34, 7 }
  0x20   : > { %452 = vst.msk [vmem:[#allocation2 + $0x48] sm:$0xff] %vm441_vm1, %v426_v38  ;;  %453 = vst.msk [vmem:[#allocation2 + $0x50] sm:$0xff] %vm441_vm1, %v362_v41  ;;  %v427_v46 = vsel %vm350_vm0, %v327_v33, %v363_v39  ;;  %v367_v49 = vrot.slane %v307_v35, 7  ;;  %v365_v51 = vsel %vm350_vm0, %v363_v39, %v364_v43  ;;  %v410_v53 = vrot.slane %v307_v35, 5 }
  0x21   : > { %454 = vst.msk [vmem:[#allocation2 + $0x58] sm:$0x3] %vm444_vm2, %v435_v42  ;;  %v436_v52 = vsel %vm350_vm0, %v364_v43, %v409_v44  ;;  %v329_v54 = vrot.slane %v308_v40, 1  ;;  %v428_v56 = vsel %vm350_vm0, %v328_v47, %v366_v48  ;;  %v369_v58 = vrot.slane %v308_v40, 7  ;;  %v470_v61 = vld [vmem:[#allocation2] ss:$2 sm:$0xff] }
  0x22   : > { %455 = vst.msk [vmem:[#allocation2 + $0x60] sm:$0xff] %vm441_vm1, %v427_v46  ;;  %456 = vst.msk [vmem:[#allocation2 + $0x68] sm:$0xff] %vm441_vm1, %v365_v51  ;;  %v368_v57 = vsel %vm350_vm0, %v366_v48, %v367_v49  ;;  %v370_v59 = vrot.slane %v309_v45, 7  ;;  %v437_v62 = vsel %vm350_vm0, %v367_v49, %v410_v53  ;;  %v411_v63 = vrot.slane %v309_v45, 5  ;;  %v478_v3 = vld [vmem:[#allocation2 + $0x2] ss:$2 sm:$0xff] }
  0x23   : > { %457 = vst.msk [vmem:[#allocation2 + $0x70] sm:$0x3] %vm444_vm2, %v436_v52  ;;  %v330_v0 = vrot.slane %v310_v50, 1  ;;  %v372_v1 = vrot.slane %v310_v50, 7  ;;  %460 = vst.msk [vmem:[#allocation2 + $0x88] sm:$0x3] %vm444_vm2, %v437_v62  ;;  %v429_v4 = vsel %vm350_vm0, %v329_v54, %v369_v58  ;;  %v485_v21 = vadd.f32 %v478_v3, %v470_v61 }
  0x24   : > { %458 = vst.msk [vmem:[#allocation2 + $0x78] sm:$0xff] %vm441_vm1, %v428_v56  ;;  %459 = vst.msk [vmem:[#allocation2 + $0x80] sm:$0xff] %vm441_vm1, %v368_v57  ;;  %v371_v5 = vsel %vm350_vm0, %v369_v58, %v370_v59  ;;  %v373_v6 = vrot.slane %v311_v55, 7  ;;  %v412_v7 = vrot.slane %v311_v55, 5  ;;  %v518_v8 = vld [vmem:[#allocation2 + $0x1] ss:$2 sm:$0xff]  ;;  %v438_v10 = vsel %vm350_vm0, %v370_v59, %v411_v63 }
  0x25   : > { %v526_v9 = vld [vmem:[#allocation2 + $0x18] ss:$2 sm:$0xff]  ;;  %461 = vst.msk [vmem:[#allocation2 + $0x90] sm:$0xff] %vm441_vm1, %v429_v4  ;;  %462 = vst.msk [vmem:[#allocation2 + $0x98] sm:$0xff] %vm441_vm1, %v371_v5  ;;  %v430_v11 = vsel %vm350_vm0, %v330_v0, %v372_v1  ;;  %v331_v12 = vrot.slane %v312_v60, 1  ;;  %v375_v13 = vrot.slane %v312_v60, 7 }
  0x26   : > { %v570_v14 = vld [vmem:[#allocation2 + $0x19] ss:$2 sm:$0xff]  ;;  %463 = vst.msk [vmem:[#allocation2 + $0xa0] sm:$0x3] %vm444_vm2, %v438_v10  ;;  %v374_v15 = vsel %vm350_vm0, %v372_v1, %v373_v6  ;;  %v439_v16 = vsel %vm350_vm0, %v373_v6, %v412_v7  ;;  %v376_v17 = vrot.slane %v313_v2, 7  ;;  %v413_v18 = vrot.slane %v313_v2, 5 }
  0x27   : > { %464 = vst.msk [vmem:[#allocation2 + $0xa8] sm:$0xff] %vm441_vm1, %v430_v11  ;;  %v538_v19 = vld [vmem:[#allocation2 + $0x1a] ss:$2 sm:$0xff]  ;;  %465 = vst.msk [vmem:[#allocation2 + $0xb0] sm:$0xff] %vm441_vm1, %v374_v15  ;;  %v431_v20 = vsel %vm350_vm0, %v331_v12, %v375_v13  ;;  %v533_v23 = vadd.f32 %v526_v9, %v518_v8  ;;  %v577_v24 = vmul.f32 0.25, %v570_v14 }
  0x28   : > { %466 = vst.msk [vmem:[#allocation2 + $0xb8] sm:$0x3] %vm444_vm2, %v439_v16  ;;  %v490_v22 = vld [vmem:[#allocation2 + $0x30] ss:$2 sm:$0xff]  ;;  %v377_v26 = vsel %vm350_vm0, %v375_v13, %v376_v17  ;;  %v440_v27 = vsel %vm350_vm0, %v376_v17, %v413_v18  ;;  %v520_v29 = vld [vmem:[#allocation2 + $0x31] ss:$2 sm:$0xff] }
  0x29   : > { %v472_v25 = vld [vmem:[#allocation2 + $0x30] ss:$2 sm:$0xff]  ;;  %467 = vst.msk [vmem:[#allocation2 + $0xc0] sm:$0xff] %vm441_vm1, %v431_v20  ;;  %468 = vst.msk [vmem:[#allocation2 + $0xc8] sm:$0xff] %vm441_vm1, %v377_v26  ;;  %v497_v31 = vadd.f32 %v490_v22, %v485_v21  ;;  %v545_v33 = vadd.f32 %v538_v19, %v533_v23  ;;  %v550_v34 = vld [vmem:[#allocation2 + $0x31] ss:$2 sm:$0xff] }
  0x2a   : > { %v480_v28 = vld [vmem:[#allocation2 + $0x32] ss:$2 sm:$0xff]  ;;  %469 = vst.msk [vmem:[#allocation2 + $0xd0] sm:$0x3] %vm444_vm2, %v440_v27  ;;  %v482_v44 = vld [vmem:[#allocation2 + $0x62] ss:$2 sm:$0xff] }
  0x2b   : > { %v528_v30 = vld [vmem:[#allocation2 + $0x48] ss:$2 sm:$0xff]  ;;  %v486_v35 = vadd.f32 %v480_v28, %v472_v25  ;;  %v557_v41 = vadd.f32 %v550_v34, %v545_v33  ;;  %v522_v45 = vld [vmem:[#allocation2 + $0x61] ss:$2 sm:$0xff]  ;;  %v530_v46 = vld [vmem:[#allocation2 + $0x78] ss:$2 sm:$0xff] }
  0x2c   : > { %v502_v32 = vld [vmem:[#allocation2 + $0x32] ss:$2 sm:$0xff]  ;;  %v534_v36 = vadd.f32 %v528_v30, %v520_v29  ;;  %v504_v47 = vld [vmem:[#allocation2 + $0x62] ss:$2 sm:$0xff]  ;;  %v552_v48 = vld [vmem:[#allocation2 + $0x61] ss:$2 sm:$0xff]  ;;  %v535_v51 = vadd.f32 %v530_v46, %v522_v45 }
  0x2d   : > { %v492_v37 = vld [vmem:[#allocation2 + $0x60] ss:$2 sm:$0xff]  ;;  %v509_v40 = vadd.f32 %v502_v32, %v497_v31  ;;  %v572_v49 = vld [vmem:[#allocation2 + $0x49] ss:$2 sm:$0xff]  ;;  %v561_v53 = vmul.f32 0.125, %v557_v41 }
  0x2e   : > { %v540_v38 = vld [vmem:[#allocation2 + $0x4a] ss:$2 sm:$0xff]  ;;  %v498_v42 = vadd.f32 %v492_v37, %v486_v35  ;;  %v542_v57 = vld [vmem:[#allocation2 + $0x7a] ss:$2 sm:$0xff]  ;;  %v554_v2 = vld [vmem:[#allocation2 + $0x91] ss:$2 sm:$0xff] }
  0x2f   : > { %v474_v39 = vld [vmem:[#allocation2 + $0x60] ss:$2 sm:$0xff]  ;;  %v546_v43 = vadd.f32 %v540_v38, %v534_v36  ;;  %v513_v52 = vmul.f32 0.0625, %v509_v40  ;;  %v494_v56 = vld [vmem:[#allocation2 + $0x90] ss:$2 sm:$0xff]  ;;  %v547_v60 = vadd.f32 %v542_v57, %v535_v51  ;;  %v578_v11 = vmul.f32 0.25, %v572_v49 }
  0x30   : > { %v487_v50 = vadd.f32 %v482_v44, %v474_v39  ;;  %v510_v54 = vadd.f32 %v504_v47, %v498_v42  ;;  %v506_v59 = vld [vmem:[#allocation2 + $0x92] ss:$2 sm:$0xff]  ;;  %v524_v3 = vld [vmem:[#allocation2 + $0x91] ss:$2 sm:$0xff] }
  0x31   : > { %v558_v55 = vadd.f32 %v552_v48, %v546_v43  ;;  %v476_v61 = vld [vmem:[#allocation2 + $0x90] ss:$2 sm:$0xff]  ;;  %v565_v63 = vadd.f32 %v561_v53, %v513_v52  ;;  %v559_v5 = vadd.f32 %v554_v2, %v547_v60  ;;  %v496_v7 = vld [vmem:[#allocation2 + $0xc0] ss:$2 sm:$0xff]  ;;  %v574_v12 = vld [vmem:[#allocation2 + $0x79] ss:$2 sm:$0xff] }
  0x32   : > { %v499_v58 = vadd.f32 %v494_v56, %v487_v50  ;;  %v484_v62 = vld [vmem:[#allocation2 + $0x92] ss:$2 sm:$0xff]  ;;  %v514_v0 = vmul.f32 0.0625, %v510_v54  ;;  %v508_v19 = vld [vmem:[#allocation2 + $0xc2] ss:$2 sm:$0xff]  ;;  %v579_v22 = vmul.f32 0.25, %v574_v12 }
  0x33   : > { %v562_v1 = vmul.f32 0.125, %v558_v55  ;;  %v488_v6 = vadd.f32 %v484_v62, %v476_v61  ;;  %v532_v8 = vld [vmem:[#allocation2 + $0xa8] ss:$2 sm:$0xff]  ;;  %v581_v9 = vadd.f32 %v577_v24, %v565_v63  ;;  %v563_v15 = vmul.f32 0.125, %v559_v5  ;;  %v556_v24 = vld [vmem:[#allocation2 + $0xc1] ss:$2 sm:$0xff] }
  0x34   : > { %v511_v4 = vadd.f32 %v506_v59, %v499_v58  ;;  %v536_v13 = vadd.f32 %v532_v8, %v524_v3  ;;  %v544_v17 = vld [vmem:[#allocation2 + $0xaa] ss:$2 sm:$0xff]  ;;  %v576_v28 = vld [vmem:[#allocation2 + $0xa9] ss:$2 sm:$0xff] }
  0x35   : > { %v566_v10 = vadd.f32 %v562_v1, %v514_v0  ;;  %v500_v16 = vadd.f32 %v496_v7, %v488_v6  ;;  %585 = vst.msk [vmem:[%s1010_s10] sm:$0xff] %vm441_vm1, %v581_v9  ;;  %v580_v31 = vmul.f32 0.25, %v576_v28 }
  0x36   : > { %v515_v14 = vmul.f32 0.0625, %v511_v4  ;;  %v548_v20 = vadd.f32 %v544_v17, %v536_v13 }
  0x37   : > { %v582_v18 = vadd.f32 %v578_v11, %v566_v10  ;;  %v512_v23 = vadd.f32 %v508_v19, %v500_v16 }
  0x38   : > { %v567_v21 = vadd.f32 %v563_v15, %v515_v14  ;;  %v560_v25 = vadd.f32 %v556_v24, %v548_v20 }
  0x39   : > { %586 = vst.msk [vmem:[%s1010_s10 + $0x8] sm:$0xff] %vm441_vm1, %v582_v18  ;;  %v516_v27 = vmul.f32 0.0625, %v512_v23 }
  0x3a   : > { %v583_v26 = vadd.f32 %v579_v22, %v567_v21  ;;  %v564_v29 = vmul.f32 0.125, %v560_v25 }
  0x3c   : > { %587 = vst.msk [vmem:[%s1010_s10 + $0x10] sm:$0xff] %vm441_vm1, %v583_v26  ;;  %v568_v30 = vadd.f32 %v564_v29, %v516_v27 }
  0x3e   : > { %v584_v32 = vadd.f32 %v580_v31, %v568_v30 }
  0x40   : > { %588 = vst.msk [vmem:[%s1010_s10 + $0x18] sm:$0xff] %vm441_vm1, %v584_v32 }
  0x41 PF: > { %s12_s13 = sadd.s32 1, %s847_s13   ;;  %s1039_s9 = smov %s839_s11 }
  0x42   : > { %p9_p9 = scmp.ge.s32.totalorder %s12_s13, 6   ;;  %s1040_s10 = smov %s843_s12 }
  0x43   : > { %s1041_s11 = smov %s1044_s14  ;;  %s1042_s12 = smov %s1048_s15 }
  0x44   :  { %11 = sbr.rel (!%p9_p9) target bundleno = 3 (0x3), region = 96 }

</bundles_post_ra>
